<compile_context>
chip_gen: v7x
topology: tpu7x:2x2x1
jax: 0.10.0
libtpu: 0.0.40
codegen_flags: <defaults>
</compile_context>

<pallas_src>
import math
import numpy as np
import jax
import jax.numpy as jnp
from jax.experimental import pallas as pl
from jax.experimental.pallas import tpu as pltpu

# ---- hyper-params consistent with INF(in_channels, band_num, time_out, hidden_dim, d_model) ----
IN_CHANNELS = 4
BAND_NUM = 3          # unused in forward
TIME_OUT = 5          # unused in forward
HIDDEN = 32
D_MODEL = 16
B = 2
H_IN, W_IN = 8, 8
EPS = 1e-5

M = B * D_MODEL                 # BatchNorm sample count per channel
K_FOLD = IN_CHANNELS * H_IN     # contraction length after folding ah into the linear weight
DD = D_MODEL * D_MODEL          # lane-dense output width (256 = 2 * 128)

# The review suggested dropping HIGHEST -> DEFAULT on the in-kernel dots.  Kept HIGHEST
# deliberately: this workload is dispatch/overhead-bound (the review's own measurement), so
# MXU pass count is not on the critical path, while DEFAULT's bf16 input rounding gets
# amplified by BatchNorm's 1/sigma and would force a much looser correctness tolerance.
# Swap to jax.lax.Precision.DEFAULT if bf16-level output accuracy is acceptable.
MXU_PREC = jax.lax.Precision.HIGHEST


def bilinear_matrix(in_size, out_size):
    """Row-interpolation matrix matching F.interpolate(mode='bilinear', align_corners=False)."""
    dst = np.arange(out_size, dtype=np.float64)
    src = (dst + 0.5) * (in_size / out_size) - 0.5
    src = np.maximum(src, 0.0)
    lo = np.minimum(np.floor(src).astype(np.int64), in_size - 1)
    hi = np.minimum(lo + 1, in_size - 1)
    frac = src - lo
    w = np.zeros((out_size, in_size), dtype=np.float32)
    w[np.arange(out_size), lo] += (1.0 - frac).astype(np.float32)
    w[np.arange(out_size), hi] += frac.astype(np.float32)
    return w


# ---------------- single fused kernel ----------------
def fused_inf_kernel(x_ref, awt_ref, gt_ref, bias_ref, gamma_ref, beta_ref, rep_ref, o_ref):
    # x_ref:    (B, C*H_IN, W_IN)   raw input, rows = (i, H_in)
    # awt_ref:  (W_IN, D_MODEL)     W-direction bilinear interpolation matrix
    # gt_ref:   (HIDDEN, C*H_IN)    linear weight with the H-interpolation folded in
    # bias/gamma/beta: (HIDDEN, 1)  per-channel column vectors
    # rep_ref:  (D_MODEL, 256)      0/1 matrix, rep[w, w*D+j] = 1 (repeat_interleave via MXU)
    # o_ref:    (B, HIDDEN, 256)    lane-dense output (reshaped to (B,HIDDEN,D,D) by wrapper)
    # Total live data < 100 KiB -> everything stays in VMEM / vregs.
    awt = awt_ref[...]
    gt = gt_ref[...]
    bias = bias_ref[...]

    ys = []
    ysum = jnp.zeros((HIDDEN, 1), jnp.float32)
    ysq = jnp.zeros((HIDDEN, 1), jnp.float32)
    for b in range(B):                                    # static unroll, B is tiny
        xb = x_ref[b]                                     # (C*H_IN, W_IN)
        # W-direction interp: t[k, w] = sum_W' x[b, k, W'] * awt[W', w]
        tb = jnp.dot(xb, awt, preferred_element_type=jnp.float32, precision=MXU_PREC)
        # linear with H-interp folded into gt:  y[n, w] = sum_k gt[n, k] * t[k, w] + bias[n]
        yb = jnp.dot(gt, tb, preferred_element_type=jnp.float32, precision=MXU_PREC) + bias
        yb = jnp.maximum(yb, 0.0)                         # ReLU
        ys.append(yb)
        # per-channel BN batch statistics (lane reductions -> XLU)
        ysum = ysum + jnp.sum(yb, axis=1, keepdims=True)
        ysq = ysq + jnp.sum(yb * yb, axis=1, keepdims=True)

    # BatchNorm1d training-mode batch statistics (biased variance), computed in-kernel.
    inv_m = 1.0 / float(M)
    mean = ysum * inv_m
    var = jnp.maximum(ysq * inv_m - mean * mean, 0.0)     # clamp: cancellation-safe
    scale = gamma_ref[...] * jax.lax.rsqrt(var + EPS)     # (HIDDEN, 1)
    shift = beta_ref[...] - mean * scale

    rep = rep_ref[...]
    for b in range(B):
        zb = ys[b] * scale + shift                        # (HIDDEN, D_MODEL)
        # repeat each value D_MODEL times along lanes -> one unmasked lane-dense store
        o_ref[b] = jnp.dot(zb, rep, preferred_element_type=jnp.float32, precision=MXU_PREC)


# ---------------- full forward (one pallas_call, one jit) ----------------
@jax.jit
def inf_forward(x, ah, awt, w, bias, gamma, beta, rep):
    # One-time parameter fold (independent of x; constant-foldable under jit for fixed params):
    #   gt[n, i*H_IN + H] = sum_h ah[h, H] * W[n, i*D_MODEL + h]
    # This is algebraically identical to "interpolate along H, then Linear".
    w2 = w.reshape(HIDDEN, IN_CHANNELS, D_MODEL)
    gt = jnp.einsum('hH,nih->niH', ah, w2,
                    precision=jax.lax.Precision.HIGHEST).reshape(HIDDEN, K_FOLD)
    x3 = x.reshape(B, K_FOLD, W_IN)                       # free reshape: rows = (i, H_in)

    out3 = pl.pallas_call(
        fused_inf_kernel,
        out_shape=jax.ShapeDtypeStruct((B, HIDDEN, DD), jnp.float32),
        grid=(1,),
        in_specs=[
            pl.BlockSpec((B, K_FOLD, W_IN), lambda i: (0, 0, 0)),
            pl.BlockSpec((W_IN, D_MODEL), lambda i: (0, 0)),
            pl.BlockSpec((HIDDEN, K_FOLD), lambda i: (0, 0)),
            pl.BlockSpec((HIDDEN, 1), lambda i: (0, 0)),
            pl.BlockSpec((HIDDEN, 1), lambda i: (0, 0)),
            pl.BlockSpec((HIDDEN, 1), lambda i: (0, 0)),
            pl.BlockSpec((D_MODEL, DD), lambda i: (0, 0)),
        ],
        out_specs=pl.BlockSpec((B, HIDDEN, DD), lambda i: (0, 0, 0)),
        compiler_params=pltpu.CompilerParams(dimension_semantics=("arbitrary",)),
    )(x3, awt, gt, bias.reshape(HIDDEN, 1), gamma.reshape(HIDDEN, 1),
      beta.reshape(HIDDEN, 1), rep)

    # (B, HIDDEN, 256) -> (B, HIDDEN, D, D): metadata-only reshape; value repeats along the
    # last axis, matching x.unsqueeze(-1).repeat(1, 1, 1, d_model).
    return out3.reshape(B, HIDDEN, D_MODEL, D_MODEL)
    # TODO(synk): BatchNorm running_mean/running_var buffer updates are stateful and not modeled.


# ---------------- pure-JAX reference (faithful op order) for the self-check ----------------
def inf_reference(x, ah, awt, w, bias, gamma, beta):
    PREC = jax.lax.Precision.HIGHEST
    t = jnp.einsum('Hh,bchw->bcHw', ah, x, precision=PREC)
    xi = jnp.einsum('bcHw,wW->bcHW', t, awt, precision=PREC)
    xr = jnp.transpose(xi, (0, 3, 1, 2)).reshape(B, D_MODEL, IN_CHANNELS * D_MODEL)
    y = jnp.matmul(xr, w.T, precision=PREC) + bias
    y = jnp.maximum(y, 0.0)
    yt = jnp.transpose(y, (0, 2, 1))                      # (B, HIDDEN, D)
    mean = jnp.mean(yt, axis=(0, 2))
    var = jnp.var(yt, axis=(0, 2))                        # biased, as BatchNorm1d uses for norm
    yn = ((yt - mean[None, :, None]) * jax.lax.rsqrt(var[None, :, None] + EPS)
          * gamma[None, :, None] + beta[None, :, None])
    return jnp.broadcast_to(yn[..., None], (B, HIDDEN, D_MODEL, D_MODEL))


if __name__ == "__main__":
    key = jax.random.PRNGKey(0)
    kx, kw, kb, kg, kbt = jax.random.split(key, 5)

    x = jax.random.normal(kx, (B, IN_CHANNELS, H_IN, W_IN), dtype=jnp.float32)

    bound = 1.0 / math.sqrt(IN_CHANNELS * D_MODEL)
    w = jax.random.uniform(kw, (HIDDEN, IN_CHANNELS * D_MODEL),
                           minval=-bound, maxval=bound, dtype=jnp.float32)
    bias = jax.random.uniform(kb, (HIDDEN,), minval=-bound, maxval=bound, dtype=jnp.float32)
    gamma = 1.0 + 0.1 * jax.random.normal(kg, (HIDDEN,), dtype=jnp.float32)
    beta = 0.1 * jax.random.normal(kbt, (HIDDEN,), dtype=jnp.float32)

    ah = jnp.asarray(bilinear_matrix(H_IN, D_MODEL))        # (D_MODEL, H_IN)
    awt = jnp.asarray(bilinear_matrix(W_IN, D_MODEL).T)     # (W_IN, D_MODEL)
    # 0/1 replication matrix: rep[w, w*D + j] = 1  (repeat_interleave along lanes via one MXU op)
    rep = jnp.asarray(np.kron(np.eye(D_MODEL, dtype=np.float32),
                              np.ones((1, D_MODEL), dtype=np.float32)))   # (16, 256)

    out = inf_forward(x, ah, awt, w, bias, gamma, beta, rep)
    out = jax.block_until_ready(out)

    assert out.shape == (B, HIDDEN, D_MODEL, D_MODEL)
    assert bool(jnp.all(jnp.isfinite(out)))

    ref = inf_reference(x, ah, awt, w, bias, gamma, beta)
    err = float(jnp.max(jnp.abs(out - ref)))
    assert err < 2e-3, f"max abs err vs reference: {err}"

    print("KERNEL_OK")
</pallas_src>

<mosaic_0001>
module attributes {stable_mosaic.version = 11 : i64} {
  func.func @fused_inf_kernel(%arg0: i32, %arg1: memref<2x32x8xf32, #tpu.memory_space<vmem>>, %arg2: memref<8x16xf32, #tpu.memory_space<vmem>>, %arg3: memref<32x32xf32, #tpu.memory_space<vmem>>, %arg4: memref<32x1xf32, #tpu.memory_space<vmem>>, %arg5: memref<32x1xf32, #tpu.memory_space<vmem>>, %arg6: memref<32x1xf32, #tpu.memory_space<vmem>>, %arg7: memref<16x256xf32, #tpu.memory_space<vmem>>, %arg8: memref<2x32x256xf32, #tpu.memory_space<vmem>>) attributes {dimension_semantics = [#tpu.dimension_semantics<arbitrary>], iteration_bounds = array<i64: 1>, scalar_prefetch = 0 : i64, scratch_operands = 0 : i64, tpu.core_type = #tpu.core_type<tc>, window_params = [{pipeline_mode = #tpu.pipeline_mode<synchronous>, transform_indices = @transform_0, window_bounds = array<i64: 2, 32, 8>}, {pipeline_mode = #tpu.pipeline_mode<synchronous>, transform_indices = @transform_1, window_bounds = array<i64: 8, 16>}, {pipeline_mode = #tpu.pipeline_mode<synchronous>, transform_indices = @transform_2, window_bounds = array<i64: 32, 32>}, {pipeline_mode = #tpu.pipeline_mode<synchronous>, transform_indices = @transform_3, window_bounds = array<i64: 32, 1>}, {pipeline_mode = #tpu.pipeline_mode<synchronous>, transform_indices = @transform_4, window_bounds = array<i64: 32, 1>}, {pipeline_mode = #tpu.pipeline_mode<synchronous>, transform_indices = @transform_5, window_bounds = array<i64: 32, 1>}, {pipeline_mode = #tpu.pipeline_mode<synchronous>, transform_indices = @transform_6, window_bounds = array<i64: 16, 256>}, {pipeline_mode = #tpu.pipeline_mode<synchronous>, transform_indices = @transform_7, window_bounds = array<i64: 2, 32, 256>}]} {
    %c0 = arith.constant 0 : index
    %c0_0 = arith.constant 0 : index
    %0 = vector.load %arg2[%c0, %c0_0] : memref<8x16xf32, #tpu.memory_space<vmem>>, vector<8x16xf32>
    %c0_1 = arith.constant 0 : index
    %c0_2 = arith.constant 0 : index
    %1 = vector.load %arg3[%c0_1, %c0_2] : memref<32x32xf32, #tpu.memory_space<vmem>>, vector<32x32xf32>
    %c0_3 = arith.constant 0 : index
    %c0_4 = arith.constant 0 : index
    %2 = vector.load %arg4[%c0_3, %c0_4] : memref<32x1xf32, #tpu.memory_space<vmem>>, vector<32x1xf32>
    %cst = arith.constant 0.000000e+00 : f32
    %3 = vector.broadcast %cst : f32 to vector<32x1xf32>
    %cst_5 = arith.constant 0.000000e+00 : f32
    %4 = vector.broadcast %cst_5 : f32 to vector<32x1xf32>
    %c0_6 = arith.constant 0 : index
    %c0_7 = arith.constant 0 : index
    %c0_8 = arith.constant 0 : index
    %5 = vector.load %arg1[%c0_6, %c0_7, %c0_8] : memref<2x32x8xf32, #tpu.memory_space<vmem>>, vector<1x32x8xf32>
    %6 = vector.shape_cast %5 : vector<1x32x8xf32> to vector<32x8xf32>
    %cst_9 = arith.constant dense<0.000000e+00> : vector<32x16xf32>
    %7 = tpu.matmul %6, %0, %cst_9 {dimension_numbers = #tpu.dot_dimension_numbers<[1], [0], [0], [1], [0, 0, 1, 1], [], []>, precision = #tpu.contract_precision<fp32>} : vector<32x8xf32>, vector<8x16xf32>, vector<32x16xf32> -> vector<32x16xf32>
    %cst_10 = arith.constant dense<0.000000e+00> : vector<32x16xf32>
    %8 = tpu.matmul %1, %7, %cst_10 {dimension_numbers = #tpu.dot_dimension_numbers<[1], [0], [0], [1], [0, 0, 1, 1], [], []>, precision = #tpu.contract_precision<fp32>} : vector<32x32xf32>, vector<32x16xf32>, vector<32x16xf32> -> vector<32x16xf32>
    %9 = vector.broadcast %2 : vector<32x1xf32> to vector<32x16xf32>
    %10 = arith.addf %8, %9 : vector<32x16xf32>
    %cst_11 = arith.constant 0.000000e+00 : f32
    %11 = vector.broadcast %cst_11 : f32 to vector<32x16xf32>
    %12 = arith.maximumf %10, %11 : vector<32x16xf32>
    %cst_12 = arith.constant dense<0.000000e+00> : vector<32xf32>
    %13 = vector.multi_reduction <add>, %12, %cst_12 [1] : vector<32x16xf32> to vector<32xf32>
    %14 = vector.shape_cast %13 : vector<32xf32> to vector<32x1xf32>
    %15 = arith.addf %3, %14 : vector<32x1xf32>
    %16 = arith.mulf %12, %12 : vector<32x16xf32>
    %cst_13 = arith.constant dense<0.000000e+00> : vector<32xf32>
    %17 = vector.multi_reduction <add>, %16, %cst_13 [1] : vector<32x16xf32> to vector<32xf32>
    %18 = vector.shape_cast %17 : vector<32xf32> to vector<32x1xf32>
    %19 = arith.addf %4, %18 : vector<32x1xf32>
    %c1 = arith.constant 1 : index
    %c0_14 = arith.constant 0 : index
    %c0_15 = arith.constant 0 : index
    %20 = vector.load %arg1[%c1, %c0_14, %c0_15] : memref<2x32x8xf32, #tpu.memory_space<vmem>>, vector<1x32x8xf32>
    %21 = vector.shape_cast %20 : vector<1x32x8xf32> to vector<32x8xf32>
    %cst_16 = arith.constant dense<0.000000e+00> : vector<32x16xf32>
    %22 = tpu.matmul %21, %0, %cst_16 {dimension_numbers = #tpu.dot_dimension_numbers<[1], [0], [0], [1], [0, 0, 1, 1], [], []>, precision = #tpu.contract_precision<fp32>} : vector<32x8xf32>, vector<8x16xf32>, vector<32x16xf32> -> vector<32x16xf32>
    %cst_17 = arith.constant dense<0.000000e+00> : vector<32x16xf32>
    %23 = tpu.matmul %1, %22, %cst_17 {dimension_numbers = #tpu.dot_dimension_numbers<[1], [0], [0], [1], [0, 0, 1, 1], [], []>, precision = #tpu.contract_precision<fp32>} : vector<32x32xf32>, vector<32x16xf32>, vector<32x16xf32> -> vector<32x16xf32>
    %24 = vector.broadcast %2 : vector<32x1xf32> to vector<32x16xf32>
    %25 = arith.addf %23, %24 : vector<32x16xf32>
    %cst_18 = arith.constant 0.000000e+00 : f32
    %26 = vector.broadcast %cst_18 : f32 to vector<32x16xf32>
    %27 = arith.maximumf %25, %26 : vector<32x16xf32>
    %cst_19 = arith.constant dense<0.000000e+00> : vector<32xf32>
    %28 = vector.multi_reduction <add>, %27, %cst_19 [1] : vector<32x16xf32> to vector<32xf32>
    %29 = vector.shape_cast %28 : vector<32xf32> to vector<32x1xf32>
    %30 = arith.addf %15, %29 : vector<32x1xf32>
    %31 = arith.mulf %27, %27 : vector<32x16xf32>
    %cst_20 = arith.constant dense<0.000000e+00> : vector<32xf32>
    %32 = vector.multi_reduction <add>, %31, %cst_20 [1] : vector<32x16xf32> to vector<32xf32>
    %33 = vector.shape_cast %32 : vector<32xf32> to vector<32x1xf32>
    %34 = arith.addf %19, %33 : vector<32x1xf32>
    %cst_21 = arith.constant 3.125000e-02 : f32
    %35 = vector.broadcast %cst_21 : f32 to vector<32x1xf32>
    %36 = arith.mulf %30, %35 : vector<32x1xf32>
    %cst_22 = arith.constant 3.125000e-02 : f32
    %37 = vector.broadcast %cst_22 : f32 to vector<32x1xf32>
    %38 = arith.mulf %34, %37 : vector<32x1xf32>
    %39 = arith.mulf %36, %36 : vector<32x1xf32>
    %40 = arith.subf %38, %39 : vector<32x1xf32>
    %cst_23 = arith.constant 0.000000e+00 : f32
    %41 = vector.broadcast %cst_23 : f32 to vector<32x1xf32>
    %42 = arith.maximumf %40, %41 : vector<32x1xf32>
    %c0_24 = arith.constant 0 : index
    %c0_25 = arith.constant 0 : index
    %43 = vector.load %arg5[%c0_24, %c0_25] : memref<32x1xf32, #tpu.memory_space<vmem>>, vector<32x1xf32>
    %cst_26 = arith.constant 9.99999974E-6 : f32
    %44 = vector.broadcast %cst_26 : f32 to vector<32x1xf32>
    %45 = arith.addf %42, %44 : vector<32x1xf32>
    %46 = math.rsqrt %45 : vector<32x1xf32>
    %47 = arith.mulf %43, %46 : vector<32x1xf32>
    %c0_27 = arith.constant 0 : index
    %c0_28 = arith.constant 0 : index
    %48 = vector.load %arg6[%c0_27, %c0_28] : memref<32x1xf32, #tpu.memory_space<vmem>>, vector<32x1xf32>
    %49 = arith.mulf %36, %47 : vector<32x1xf32>
    %50 = arith.subf %48, %49 : vector<32x1xf32>
    %c0_29 = arith.constant 0 : index
    %c0_30 = arith.constant 0 : index
    %51 = vector.load %arg7[%c0_29, %c0_30] : memref<16x256xf32, #tpu.memory_space<vmem>>, vector<16x256xf32>
    %52 = vector.broadcast %47 : vector<32x1xf32> to vector<32x16xf32>
    %53 = arith.mulf %12, %52 : vector<32x16xf32>
    %54 = vector.broadcast %50 : vector<32x1xf32> to vector<32x16xf32>
    %55 = arith.addf %53, %54 : vector<32x16xf32>
    %cst_31 = arith.constant dense<0.000000e+00> : vector<32x256xf32>
    %56 = tpu.matmul %55, %51, %cst_31 {dimension_numbers = #tpu.dot_dimension_numbers<[1], [0], [0], [1], [0, 0, 1, 1], [], []>, precision = #tpu.contract_precision<fp32>} : vector<32x16xf32>, vector<16x256xf32>, vector<32x256xf32> -> vector<32x256xf32>
    %c0_32 = arith.constant 0 : index
    %c0_33 = arith.constant 0 : index
    %c0_34 = arith.constant 0 : index
    %57 = vector.load %arg8[%c0_32, %c0_33, %c0_34] : memref<2x32x256xf32, #tpu.memory_space<vmem>>, vector<1x32x256xf32>
    %58 = vector.shape_cast %57 : vector<1x32x256xf32> to vector<32x256xf32>
    %59 = vector.shape_cast %56 : vector<32x256xf32> to vector<1x32x256xf32>
    tpu.vector_store %arg8[%c0_32, %c0_33, %c0_34], %59 {strides = array<i32>} : memref<2x32x256xf32, #tpu.memory_space<vmem>>, vector<1x32x256xf32>,
    %60 = vector.broadcast %47 : vector<32x1xf32> to vector<32x16xf32>
    %61 = arith.mulf %27, %60 : vector<32x16xf32>
    %62 = vector.broadcast %50 : vector<32x1xf32> to vector<32x16xf32>
    %63 = arith.addf %61, %62 : vector<32x16xf32>
    %cst_35 = arith.constant dense<0.000000e+00> : vector<32x256xf32>
    %64 = tpu.matmul %63, %51, %cst_35 {dimension_numbers = #tpu.dot_dimension_numbers<[1], [0], [0], [1], [0, 0, 1, 1], [], []>, precision = #tpu.contract_precision<fp32>} : vector<32x16xf32>, vector<16x256xf32>, vector<32x256xf32> -> vector<32x256xf32>
    %c1_36 = arith.constant 1 : index
    %c0_37 = arith.constant 0 : index
    %c0_38 = arith.constant 0 : index
    %65 = vector.load %arg8[%c1_36, %c0_37, %c0_38] : memref<2x32x256xf32, #tpu.memory_space<vmem>>, vector<1x32x256xf32>
    %66 = vector.shape_cast %65 : vector<1x32x256xf32> to vector<32x256xf32>
    %67 = vector.shape_cast %64 : vector<32x256xf32> to vector<1x32x256xf32>
    tpu.vector_store %arg8[%c1_36, %c0_37, %c0_38], %67 {strides = array<i32>} : memref<2x32x256xf32, #tpu.memory_space<vmem>>, vector<1x32x256xf32>,
    return
  }
  func.func @transform_0(%arg0: i32) -> (i32, i32, i32) {
    %c0_i32 = arith.constant 0 : i32
    %c0_i32_0 = arith.constant 0 : i32
    %c0_i32_1 = arith.constant 0 : i32
    %c0_i32_2 = arith.constant 0 : i32
    return %c0_i32, %c0_i32_0, %c0_i32_1 : i32, i32, i32
  }
  func.func @transform_1(%arg0: i32) -> (i32, i32) {
    %c0_i32 = arith.constant 0 : i32
    %c0_i32_0 = arith.constant 0 : i32
    %c0_i32_1 = arith.constant 0 : i32
    return %c0_i32, %c0_i32_0 : i32, i32
  }
  func.func @transform_2(%arg0: i32) -> (i32, i32) {
    %c0_i32 = arith.constant 0 : i32
    %c0_i32_0 = arith.constant 0 : i32
    %c0_i32_1 = arith.constant 0 : i32
    return %c0_i32, %c0_i32_0 : i32, i32
  }
  func.func @transform_3(%arg0: i32) -> (i32, i32) {
    %c0_i32 = arith.constant 0 : i32
    %c0_i32_0 = arith.constant 0 : i32
    %c0_i32_1 = arith.constant 0 : i32
    return %c0_i32, %c0_i32_0 : i32, i32
  }
  func.func @transform_4(%arg0: i32) -> (i32, i32) {
    %c0_i32 = arith.constant 0 : i32
    %c0_i32_0 = arith.constant 0 : i32
    %c0_i32_1 = arith.constant 0 : i32
    return %c0_i32, %c0_i32_0 : i32, i32
  }
  func.func @transform_5(%arg0: i32) -> (i32, i32) {
    %c0_i32 = arith.constant 0 : i32
    %c0_i32_0 = arith.constant 0 : i32
    %c0_i32_1 = arith.constant 0 : i32
    return %c0_i32, %c0_i32_0 : i32, i32
  }
  func.func @transform_6(%arg0: i32) -> (i32, i32) {
    %c0_i32 = arith.constant 0 : i32
    %c0_i32_0 = arith.constant 0 : i32
    %c0_i32_1 = arith.constant 0 : i32
    return %c0_i32, %c0_i32_0 : i32, i32
  }
  func.func @transform_7(%arg0: i32) -> (i32, i32, i32) {
    %c0_i32 = arith.constant 0 : i32
    %c0_i32_0 = arith.constant 0 : i32
    %c0_i32_1 = arith.constant 0 : i32
    %c0_i32_2 = arith.constant 0 : i32
    return %c0_i32, %c0_i32_0, %c0_i32_1 : i32, i32, i32
  }
}

</mosaic_0001>

<bundles_post_ra>
// kernel: inf_forward.1
= control target key start
LH: loop header
LB: loop body
LE: loop exit
PB: predicated region body
PF: predicated region fallthrough
CT: control target
= control target key end

     0   :  { %vm39_vm0 = vcmask 64512   ;;  %vm647_vm1 = vcmask 261120   ;;  %vm1278_vm2 = vcmask 130048   ;;  %s5391_s1 = inlined_call_operand.vmem [shape: f32[8,16], index: 1, kind: input, shape index: {}]   ;;  %s5392_s0 = inlined_call_operand.vmem [shape: f32[2,32,8], index: 0, kind: input, shape index: {}]   ;;  %s5393_s2 = inlined_call_operand.vmem [shape: f32[32,32], index: 2, kind: input, shape index: {}]   ;;  %s5394_s3 = inlined_call_operand.vmem [shape: f32[32,1], index: 3, kind: input, shape index: {}]   ;;  %s5395_s4 = inlined_call_operand.vmem [shape: f32[32,1], index: 4, kind: input, shape index: {}]   ;;  %s5396_s5 = inlined_call_operand.vmem [shape: f32[32,1], index: 5, kind: input, shape index: {}]   ;;  %s5397_s6 = inlined_call_operand.vmem [shape: f32[16,256], index: 6, kind: input, shape index: {}]   ;;  %s5398_s7 = inlined_call_operand.vmem [shape: f32[2,32,256], index: 7, kind: output, shape index: {}]  }
   0x1   :  { %v26_v0 = vld [vmem:[%s5391_s1] sm:$0xff]  ;;  %v36_v2 = vld [vmem:[%s5392_s0 + $0x8] sm:$0xff]  ;;  %v37_v6 = vld [vmem:[%s5392_s0 + $0x10] sm:$0xff] }
   0x2   :  { %v35_v1 = vld [vmem:[%s5392_s0] sm:$0xff]  ;;  %v4801_v3 = vand.u32 4294901760, %v26_v0  ;;  %v44_v5 = vsel %vm39_vm0, %v36_v2, 0  ;;  %v38_v7 = vld [vmem:[%s5392_s0 + $0x18] sm:$0xff]  ;;  %v47_v10 = vsel %vm39_vm0, %v37_v6, 0  ;;  %v3991_v36 = vld [vmem:[%s5392_s0 + $0x28] sm:$0xff] }
   0x3   :  { %v41_v4 = vsel %vm39_vm0, %v35_v1, 0  ;;  %v4813_v9 = vand.u32 4294901760, %v44_v5  ;;  %v50_v11 = vsel %vm39_vm0, %v38_v7, 0  ;;  %v4821_v13 = vand.u32 4294901760, %v47_v10  ;;  %v3990_v34 = vld [vmem:[%s5392_s0 + $0x20] sm:$0xff]  ;;  %v3992_v37 = vld [vmem:[%s5392_s0 + $0x30] sm:$0xff] }
   0x4   :  { %v4811_v8 = vand.u32 4294901760, %v41_v4  ;;  %4158 = vmatprep.subr.mxu0 %v4801_v3  ;;  %v4819_v12 = vsub.f32 %v26_v0, %v4801_v3  ;;  %v4823_v14 = vand.u32 4294901760, %v50_v11  ;;  %v1321_v35 = vsel %vm39_vm0, %v3990_v34, 0  ;;  %v3993_v41 = vld [vmem:[%s5392_s0 + $0x38] sm:$0xff]  ;;  %v27_v62 = vld [vmem:[%s5393_s2] sm:$0xff]  ;;  %v28_v0 = vld [vmem:[%s5393_s2 + $0x8] sm:$0xff] }
   0x5   :  { %4159 = vmatpush3.msra.mxu0 %v4801_v3  ;;  %v129_v16 = vsub.f32 %v44_v5, %v4813_v9  ;;  %v139_v18 = vsub.f32 %v47_v10, %v4821_v13  ;;  %v4859_v38 = vand.u32 4294901760, %v1321_v35  ;;  %v1324_v39 = vsel %vm39_vm0, %v3991_v36, 0  ;;  %v30_v6 = vld [vmem:[%s5393_s2 + $0x18] sm:$0xff] }
   0x6   :  { %v119_v15 = vsub.f32 %v41_v4, %v4811_v8  ;;  %v4829_v17 = vand.u32 4294901760, %v4819_v12  ;;  %v149_v19 = vsub.f32 %v50_v11, %v4823_v14  ;;  %v1327_v40 = vsel %vm39_vm0, %v3992_v37, 0  ;;  %v29_v4 = vld [vmem:[%s5393_s2 + $0x10] sm:$0xff] }
   0x7   :  { %v130_v21 = vand.u32 4294901760, %v129_v16  ;;  %v140_v23 = vand.u32 4294901760, %v139_v18  ;;  %v1408_v42 = vand.u32 4294901760, %v1324_v39  ;;  %v1399_v43 = vsub.f32 %v1321_v35, %v4859_v38 }
   0x8   :  { %v120_v20 = vand.u32 4294901760, %v119_v15  ;;  %v162_v22 = vsub.f32 %v4819_v12, %v4829_v17  ;;  %v150_v24 = vand.u32 4294901760, %v149_v19  ;;  %v1418_v44 = vand.u32 4294901760, %v1327_v40 }
   0x9   :  { %v131_v26 = vsub.f32 %v129_v16, %v130_v21  ;;  %v141_v28 = vsub.f32 %v139_v18, %v140_v23  ;;  %v1330_v45 = vsel %vm39_vm0, %v3993_v41, 0  ;;  %v1409_v46 = vsub.f32 %v1324_v39, %v1408_v42 }
   0xa   :  { %v121_v25 = vsub.f32 %v119_v15, %v120_v20  ;;  %v4835_v27 = vand.u32 4294901760, %v162_v22  ;;  %v151_v29 = vsub.f32 %v149_v19, %v150_v24  ;;  %v1428_v47 = vand.u32 4294901760, %v1330_v45 }
   0xb   :  { %v132_v31 = vand.u32 4294901760, %v131_v26  ;;  %v142_v32 = vand.u32 4294901760, %v141_v28  ;;  %v1400_v48 = vand.u32 4294901760, %v1399_v43  ;;  %v1419_v49 = vsub.f32 %v1327_v40, %v1418_v44 }
   0xc   :  { %v122_v30 = vand.u32 4294901760, %v121_v25  ;;  %4166 = vmatprep.subr.mxu0 %v4835_v27  ;;  %v152_v33 = vand.u32 4294901760, %v151_v29  ;;  %v1410_v50 = vand.u32 4294901760, %v1409_v46  ;;  %v1429_v51 = vsub.f32 %v1330_v45, %v1428_v47 }
   0xd   :  { %v1401_v52 = vsub.f32 %v1399_v43, %v1400_v48  ;;  %v1420_v53 = vand.u32 4294901760, %v1419_v49  ;;  %v649_v63 = vsel %vm647_vm1, %v27_v62, 0  ;;  %v652_v2 = vsel %vm647_vm1, %v28_v0, 0 }
   0xe   :  { %4160 = vmatprep.mubr.f32.mxu0 %v122_v30  ;;  %v1411_v54 = vsub.f32 %v1409_v46, %v1410_v50  ;;  %v1430_v55 = vand.u32 4294901760, %v1429_v51  ;;  %v4899_v1 = vand.u32 4294901760, %v649_v63  ;;  %v655_v5 = vsel %vm647_vm1, %v29_v4, 0 }
   0xf   :  { %4161 = vmatmul.mubr.f32.vlgmr.msra.gmra.mrb[0].mxu0 %v132_v31  ;;  %v1402_v56 = vand.u32 4294901760, %v1401_v52  ;;  %v1421_v57 = vsub.f32 %v1419_v49, %v1420_v53  ;;  %v4750_v11 = vmov 0  }
  0x10   :  { %4167 = vmatpush3.msra.mxu0 %v4835_v27  ;;  %4163 = vmatprep.mubr.f32.mxu0 %v142_v32  ;;  %v1412_v58 = vand.u32 4294901760, %v1411_v54  ;;  %v1431_v59 = vsub.f32 %v1429_v51, %v1430_v55 }
  0x11   :  { %4174 = vmatprep.subr.mxu0 %v4819_v12  ;;  %v1422_v60 = vand.u32 4294901760, %v1421_v57  ;;  %4740 = vset.pattern.permute.xlu0 %v4750_v11 }
  0x12   :  { %v1432_v61 = vand.u32 4294901760, %v1431_v59  ;;  %4741 = vset.pattern.permute.xlu1 %v4750_v11 }
  0x13   :  { %4164 = vmatmul.mubr.f32.gmra.mrb[2].mxu0 %v152_v33 }
  0x14   :  { %4168 = vmatprep.mubr.f32.mxu0 %v4811_v8 }
  0x17   :  { %4169 = vmatmul.mubr.f32.vlgmr.msra.gmra.mrb[0].mxu0 %v4813_v9 }
  0x18   :  { %4175 = vmatpush3.msra.mxu0 %v4819_v12  ;;  %4171 = vmatprep.mubr.f32.mxu0 %v4821_v13 }
  0x19   :  { %4182 = vmatprep.subr.mxu0 %v4801_v3 }
  0x1b   :  { %4172 = vmatmul.mubr.f32.gmra.mrb[2].mxu0 %v4823_v14 }
  0x1c   :  { %4176 = vmatprep.mubr.f32.mxu0 %v119_v15  ;;  %v34_v15 = vld [vmem:[%s5394_s3 + $0x18] sm:$0xff] }
  0x1f   :  { %4177 = vmatmul.mubr.f32.vlgmr.msra.gmra.mrb[0].mxu0 %v129_v16  ;;  %v4931_v16 = vand.u32 4294901760, %v652_v2 }
  0x20   :  { %4183 = vmatpush3.msra.mxu0 %v4801_v3  ;;  %4179 = vmatprep.mubr.f32.mxu0 %v139_v18 }
  0x21   :  { %4190 = vmatprep.subr.mxu0 %v4829_v17  ;;  %v4936_v18 = vsub.f32 %v652_v2, %v4931_v16 }
  0x23   :  { %4180 = vmatmul.mubr.f32.gmra.mrb[2].mxu0 %v149_v19 }
  0x24   :  { %4184 = vmatprep.mubr.f32.mxu0 %v120_v20 }
  0x27   :  { %4185 = vmatmul.mubr.f32.vlgmr.msra.gmra.mrb[0].mxu0 %v130_v21 }
  0x28   :  { %4191 = vmatpush3.msra.mxu0 %v4829_v17  ;;  %4187 = vmatprep.mubr.f32.mxu0 %v140_v23 }
  0x29   :  { %4198 = vmatprep.subr.mxu0 %v4801_v3 }
  0x2b   :  { %4188 = vmatmul.mubr.f32.gmra.mrb[2].mxu0 %v150_v24  ;;  %v4944_v24 = vand.u32 4294901760, %v4936_v18 }
  0x2c   :  { %4192 = vmatprep.mubr.f32.mxu0 %v4811_v8 }
  0x2d   :  { %v742_v35 = vsub.f32 %v4936_v18, %v4944_v24 }
  0x2f   :  { %4193 = vmatmul.mubr.f32.vlgmr.msra.gmra.mrb[0].mxu0 %v4813_v9 }
  0x30   :  { %4199 = vmatpush3.msra.mxu0 %v4801_v3  ;;  %4195 = vmatprep.mubr.f32.mxu0 %v4821_v13 }
  0x31   :  { %4290 = vmatprep.subr.mxu0 %v4801_v3 }
  0x33   :  { %4196 = vmatmul.mubr.f32.gmra.mrb[2].mxu0 %v4823_v14 }
  0x34   :  { %4200 = vmatprep.mubr.f32.mxu0 %v4811_v8  ;;  %v658_v8 = vsel %vm647_vm1, %v30_v6, 0 }
  0x35   :  { %v4938_v19 = vand.u32 4294901760, %v658_v8 }
  0x37   :  { %4201 = vmatmul.mubr.f32.vlgmr.msra.gmra.mrb[0].mxu0 %v4813_v9  ;;  %v4947_v26 = vsub.f32 %v658_v8, %v4938_v19 }
  0x38   :  { %4291 = vmatpush3.msra.mxu0 %v4801_v3  ;;  %4203 = vmatprep.mubr.f32.mxu0 %v4821_v13  ;;  %v33_v13 = vld [vmem:[%s5394_s3 + $0x10] sm:$0xff] }
  0x39   :  { %4298 = vmatprep.subr.mxu0 %v4835_v27  ;;  %639 = vperm.xlu1 %4741, %v33_v13  }
  0x3b   :  { %4204 = vmatmul.mubr.f32.gmra.mrb[2].mxu0 %v4823_v14  ;;  %v32_v14 = vld [vmem:[%s5394_s3 + $0x8] sm:$0xff] }
  0x3c   :  { %4292 = vmatprep.mubr.f32.mxu0 %v1402_v56 }
  0x3d   :  { %644 = vperm.xlu1 %4741, %v34_v15  }
  0x3f   :  { %4293 = vmatmul.mubr.f32.vlgmr.msra.gmra.mrb[4].mxu0 %v1412_v58 }
  0x40   :  { %4299 = vmatpush3.msra.mxu0 %v4835_v27  ;;  %4295 = vmatprep.mubr.f32.mxu0 %v1422_v60 }
  0x41   :  { %4306 = vmatprep.subr.mxu0 %v4819_v12 }
  0x43   :  { %4296 = vmatmul.mubr.f32.gmra.mrb[6].mxu0 %v1432_v61 }
  0x44   :  { %4300 = vmatprep.mubr.f32.mxu0 %v4859_v38 }
  0x47   :  { %4301 = vmatmul.mubr.f32.vlgmr.msra.gmra.mrb[4].mxu0 %v1408_v42 }
  0x48   :  { %4307 = vmatpush3.msra.mxu0 %v4819_v12  ;;  %4303 = vmatprep.mubr.f32.mxu0 %v1418_v44  ;;  %v31_v12 = vld [vmem:[%s5394_s3] sm:$0xff] }
  0x49   :  { %4314 = vmatprep.subr.mxu0 %v4801_v3  ;;  %629 = vperm.xlu0 %4740, %v31_v12  }
  0x4b   :  { %4304 = vmatmul.mubr.f32.gmra.mrb[6].mxu0 %v1428_v47 }
  0x4c   :  { %4308 = vmatprep.mubr.f32.mxu0 %v1399_v43 }
  0x4d   :  { %634 = vperm.xlu0 %4740, %v32_v14  }
  0x4f   :  { %4309 = vmatmul.mubr.f32.vlgmr.msra.gmra.mrb[4].mxu0 %v1409_v46 }
  0x50   :  { %4315 = vmatpush3.msra.mxu0 %v4801_v3  ;;  %4311 = vmatprep.mubr.f32.mxu0 %v1419_v49 }
  0x51   :  { %4322 = vmatprep.subr.mxu0 %v4829_v17 }
  0x53   :  { %4312 = vmatmul.mubr.f32.gmra.mrb[6].mxu0 %v1429_v51 }
  0x54   :  { %4316 = vmatprep.mubr.f32.mxu0 %v1400_v48  ;;  %v4965_v48 = vand.u32 4294901760, %v742_v35 }
  0x57   :  { %4317 = vmatmul.mubr.f32.vlgmr.msra.gmra.mrb[4].mxu0 %v1410_v50 }
  0x58   :  { %4323 = vmatpush3.msra.mxu0 %v4829_v17  ;;  %4319 = vmatprep.mubr.f32.mxu0 %v1420_v53  ;;  %v4933_v17 = vand.u32 4294901760, %v655_v5 }
  0x59   :  { %4330 = vmatprep.subr.mxu0 %v4801_v3 }
  0x5a   :  { %v4941_v20 = vsub.f32 %v655_v5, %v4933_v17 }
  0x5b   :  { %4320 = vmatmul.mubr.f32.gmra.mrb[6].mxu0 %v1430_v55 }
  0x5c   :  { %4324 = vmatprep.mubr.f32.mxu0 %v4859_v38  ;;  %v4950_v28 = vand.u32 4294901760, %v4941_v20 }
  0x5f   :  { %4325 = vmatmul.mubr.f32.vlgmr.msra.gmra.mrb[4].mxu0 %v1408_v42 }
  0x60   :  { %4331 = vmatpush3.msra.mxu0 %v4801_v3  ;;  %4327 = vmatprep.mubr.f32.mxu0 %v1418_v44  ;;  %v4902_v3 = vsub.f32 %v649_v63, %v4899_v1 }
  0x62   :  { %v4912_v7 = vand.u32 4294901760, %v4902_v3 }
  0x63   :  { %4328 = vmatmul.mubr.f32.gmra.mrb[6].mxu0 %v1428_v47 }
  0x64   :  { %4332 = vmatprep.mubr.f32.mxu0 %v4859_v38  ;;  %v732_v9 = vsub.f32 %v4902_v3, %v4912_v7  ;;  %v4958_v38 = vand.u32 4294901760, %v4947_v26 }
  0x66   :  { %v4916_v10 = vand.u32 4294901760, %v732_v9  ;;  %v762_v52 = vsub.f32 %v4947_v26, %v4958_v38 }
  0x67   :  { %4333 = vmatmul.mubr.f32.vlgmr.msra.gmra.mrb[4].mxu0 %v1408_v42  ;;  %v752_v42 = vsub.f32 %v4941_v20, %v4950_v28 }
  0x68   :  { %4335 = vmatprep.mubr.f32.mxu0 %v1418_v44  ;;  %4214 = vmatprep.mubr.f32.mxu1 %v4916_v10  ;;  %v4974_v60 = vand.u32 4294901760, %v762_v52 }
  0x69   :  { %v4971_v55 = vand.u32 4294901760, %v752_v42 }
  0x6b   :  { %4336 = vmatmul.mubr.f32.gmra.mrb[6].mxu0 %v1428_v47 }
  0x6c   :  { %4416 = vmatprep.mubr.f32.mxu0 %v4899_v1 }
 0x10a   :  { %v4202_v21 = vpop.f32.mrb[0].mxu0 }
 0x10b   :  { %v664_v22 = vand.u32 4294901760, %v4202_v21  ;;  %v605_v23 = vpop.f32.mrb[1].mxu0 }
 0x10c   :  { %v661_v25 = vand.u32 4294901760, %v605_v23 }
 0x10d   :  { %v778_v27 = vsub.f32 %v4202_v21, %v664_v22 }
 0x10e   :  { %v4952_v29 = vpack.c.bf16 %v664_v22, %v661_v25  ;;  %v771_v30 = vsub.f32 %v605_v23, %v661_v25  ;;  %v4205_v31 = vpop.f32.mrb[2].mxu0 }
 0x10f   :  { %v779_v32 = vand.u32 4294901760, %v778_v27  ;;  %v670_v33 = vand.u32 4294901760, %v4205_v31  ;;  %v617_v34 = vpop.f32.mrb[3].mxu0 }
 0x110   :  { %v772_v36 = vand.u32 4294901760, %v771_v30  ;;  %v667_v37 = vand.u32 4294901760, %v617_v34  ;;  %4423 = vmatprep.subr.bf16.mxu1 %v4952_v29  ;;  %v4438_v39 = vpack.c.bf16 %v778_v27, %v771_v30 }
 0x111   :  { %v780_v40 = vsub.f32 %v778_v27, %v779_v32  ;;  %v792_v41 = vsub.f32 %v4205_v31, %v670_v33  ;;  %4425 = vmatpush3.bf16.msra.mxu1 %v4952_v29 }
 0x112   :  { %v773_v43 = vsub.f32 %v771_v30, %v772_v36  ;;  %v4963_v44 = vpack.c.bf16 %v670_v33, %v667_v37  ;;  %v785_v45 = vsub.f32 %v617_v34, %v667_v37  ;;  %v4454_v46 = vpack.c.bf16 %v779_v32, %v772_v36 }
 0x113   :  { %v793_v47 = vand.u32 4294901760, %v792_v41  ;;  %v781_v49 = vand.u32 4294901760, %v780_v40 }
 0x114   :  { %v786_v50 = vand.u32 4294901760, %v785_v45  ;;  %4427 = vmatprep.subr.bf16.mxu1 %v4963_v44  ;;  %v774_v51 = vand.u32 4294901760, %v773_v43  ;;  %v4442_v53 = vpack.c.bf16 %v792_v41, %v785_v45 }
 0x115   :  { %v794_v54 = vsub.f32 %v792_v41, %v793_v47  ;;  %4429 = vmatpush3.bf16.msra.mxu1 %v4963_v44 }
 0x116   :  { %v787_v56 = vsub.f32 %v785_v45, %v786_v50  ;;  %v4430_v57 = vpack.c.bf16 %v781_v49, %v774_v51  ;;  %v4458_v58 = vpack.c.bf16 %v793_v47, %v786_v50 }
 0x117   :  { %v795_v59 = vand.u32 4294901760, %v794_v54 }
 0x118   :  { %4215 = vmatmul.mubr.f32.vlgmr.msra.gmra.mrb[0].mxu1 %v4965_v48  ;;  %4431 = vmatprep.subr.bf16.mxu1 %v4430_v57  ;;  %v788_v61 = vand.u32 4294901760, %v787_v56 }
 0x119   :  { %4433 = vmatpush3.bf16.msra.mxu1 %v4430_v57  ;;  %4217 = vmatprep.mubr.f32.mxu1 %v4971_v55 }
 0x11a   :  { %v4434_v62 = vpack.c.bf16 %v795_v59, %v788_v61 }
 0x11c   :  { %4218 = vmatmul.mubr.f32.gmra.mrb[2].mxu1 %v4974_v60  ;;  %4435 = vmatprep.subr.bf16.mxu1 %v4434_v62 }
 0x11d   :  { %4437 = vmatpush3.bf16.msra.mxu1 %v4434_v62  ;;  %4228 = vmatprep.mubr.f32.mxu1 %v4899_v1 }
 0x11e   :  { %4439 = vmatprep.subr.bf16.mxu1 %v4438_v39 }
 0x120   :  { %4229 = vmatmul.mubr.f32.vlgmr.msra.gmra.mrb[0].mxu1 %v4931_v16 }
 0x121   :  { %4441 = vmatpush3.bf16.msra.mxu1 %v4438_v39  ;;  %4231 = vmatprep.mubr.f32.mxu1 %v4933_v17 }
 0x122   :  { %4443 = vmatprep.subr.bf16.mxu1 %v4442_v53 }
 0x124   :  { %4232 = vmatmul.mubr.f32.gmra.mrb[2].mxu1 %v4938_v19 }
 0x125   :  { %4445 = vmatpush3.bf16.msra.mxu1 %v4442_v53  ;;  %4242 = vmatprep.mubr.f32.mxu1 %v4902_v3  ;;  %v640_v53 = vpop.permute.xlu1 %639 }
 0x126   :  { %4447 = vmatprep.subr.bf16.mxu1 %v4952_v29 }
 0x128   :  { %4243 = vmatmul.mubr.f32.vlgmr.msra.gmra.mrb[0].mxu1 %v4936_v18 }
 0x129   :  { %4449 = vmatpush3.bf16.msra.mxu1 %v4952_v29  ;;  %4245 = vmatprep.mubr.f32.mxu1 %v4941_v20 }
 0x12a   :  { %4451 = vmatprep.subr.bf16.mxu1 %v4963_v44 }
 0x12c   :  { %4246 = vmatmul.mubr.f32.gmra.mrb[2].mxu1 %v4947_v26 }
 0x12d   :  { %4453 = vmatpush3.bf16.msra.mxu1 %v4963_v44  ;;  %4256 = vmatprep.mubr.f32.mxu1 %v4912_v7 }
 0x12e   :  { %4455 = vmatprep.subr.bf16.mxu1 %v4454_v46 }
 0x130   :  { %4257 = vmatmul.mubr.f32.vlgmr.msra.gmra.mrb[0].mxu1 %v4944_v24 }
 0x131   :  { %4457 = vmatpush3.bf16.msra.mxu1 %v4454_v46  ;;  %4259 = vmatprep.mubr.f32.mxu1 %v4950_v28 }
 0x132   :  { %4459 = vmatprep.subr.bf16.mxu1 %v4458_v58 }
 0x134   :  { %4260 = vmatmul.mubr.f32.gmra.mrb[2].mxu1 %v4958_v38 }
 0x135   :  { %4461 = vmatpush3.bf16.msra.mxu1 %v4458_v58  ;;  %4270 = vmatprep.mubr.f32.mxu1 %v4899_v1 }
 0x136   :  { %4463 = vmatprep.subr.bf16.mxu1 %v4952_v29 }
 0x138   :  { %4271 = vmatmul.mubr.f32.vlgmr.msra.gmra.mrb[0].mxu1 %v4931_v16 }
 0x139   :  { %4465 = vmatpush3.bf16.msra.mxu1 %v4952_v29  ;;  %4273 = vmatprep.mubr.f32.mxu1 %v4933_v17 }
 0x13a   :  { %4467 = vmatprep.subr.bf16.mxu1 %v4963_v44  ;;  %v4334_v63 = vpop.f32.mrb[4].mxu0 }
 0x13b   :  { %v1911_v0 = vand.u32 4294901760, %v4334_v63  ;;  %v1885_v2 = vpop.f32.mrb[5].mxu0 }
 0x13c   :  { %v1908_v4 = vand.u32 4294901760, %v1885_v2  ;;  %4274 = vmatmul.mubr.f32.gmra.mrb[2].mxu1 %v4938_v19 }
 0x13d   :  { %v2025_v5 = vsub.f32 %v4334_v63, %v1911_v0  ;;  %4469 = vmatpush3.bf16.msra.mxu1 %v4963_v44  ;;  %4284 = vmatprep.mubr.f32.mxu1 %v4899_v1  ;;  %v645_v63 = vpop.permute.xlu1 %644 }
 0x13e   :  { %v5003_v6 = vpack.c.bf16 %v1911_v0, %v1908_v4  ;;  %v2018_v8 = vsub.f32 %v1885_v2, %v1908_v4  ;;  %v4337_v9 = vpop.f32.mrb[6].mxu0 }
 0x13f   :  { %v2026_v11 = vand.u32 4294901760, %v2025_v5  ;;  %v1917_v12 = vand.u32 4294901760, %v4337_v9  ;;  %v1897_v13 = vpop.f32.mrb[7].mxu0 }
 0x140   :  { %v2019_v14 = vand.u32 4294901760, %v2018_v8  ;;  %v1914_v15 = vand.u32 4294901760, %v1897_v13  ;;  %4285 = vmatmul.mubr.f32.vlgmr.msra.gmra.mrb[0].mxu1 %v4931_v16  ;;  %4471 = vmatprep.subr.bf16.mxu1 %v5003_v6  ;;  %v4486_v21 = vpack.c.bf16 %v2025_v5, %v2018_v8 }
 0x141   :  { %v2027_v22 = vsub.f32 %v2025_v5, %v2026_v11  ;;  %v2039_v23 = vsub.f32 %v4337_v9, %v1917_v12  ;;  %4511 = vmatprep.subr.bf16.mxu0 %v5003_v6  ;;  %4473 = vmatpush3.bf16.msra.mxu1 %v5003_v6 }
 0x142   :  { %v2020_v25 = vsub.f32 %v2018_v8, %v2019_v14  ;;  %v4474_v27 = vpack.c.bf16 %v1917_v12, %v1914_v15  ;;  %v2032_v29 = vsub.f32 %v1897_v13, %v1914_v15  ;;  %4513 = vmatpush3.bf16.msra.mxu0 %v5003_v6  ;;  %4287 = vmatprep.mubr.f32.mxu1 %v4933_v17 }
 0x143   :  { %v2040_v30 = vand.u32 4294901760, %v2039_v23  ;;  %v2028_v31 = vand.u32 4294901760, %v2027_v22  ;;  %v4502_v32 = vpack.c.bf16 %v2026_v11, %v2019_v14 }
 0x144   :  { %v2033_v33 = vand.u32 4294901760, %v2032_v29  ;;  %4288 = vmatmul.mubr.f32.gmra.mrb[2].mxu1 %v4938_v19  ;;  %4475 = vmatprep.subr.bf16.mxu1 %v4474_v27  ;;  %v2021_v34 = vand.u32 4294901760, %v2020_v25  ;;  %v4490_v35 = vpack.c.bf16 %v2039_v23, %v2032_v29 }
 0x145   :  { %v2041_v36 = vsub.f32 %v2039_v23, %v2040_v30  ;;  %4515 = vmatprep.subr.bf16.mxu0 %v4474_v27  ;;  %4477 = vmatpush3.bf16.msra.mxu1 %v4474_v27 }
 0x146   :  { %v2034_v37 = vsub.f32 %v2032_v29, %v2033_v33  ;;  %4517 = vmatpush3.bf16.msra.mxu0 %v4474_v27  ;;  %4346 = vmatprep.mubr.f32.mxu1 %v4916_v10  ;;  %v4478_v39 = vpack.c.bf16 %v2028_v31, %v2021_v34  ;;  %v4506_v40 = vpack.c.bf16 %v2040_v30, %v2033_v33 }
 0x147   :  { %v2042_v41 = vand.u32 4294901760, %v2041_v36 }
 0x148   :  { %4347 = vmatmul.mubr.f32.vlgmr.msra.gmra.mrb[4].mxu1 %v4965_v48  ;;  %4479 = vmatprep.subr.bf16.mxu1 %v4478_v39  ;;  %v2035_v42 = vand.u32 4294901760, %v2034_v37 }
 0x149   :  { %4481 = vmatpush3.bf16.msra.mxu1 %v4478_v39  ;;  %4349 = vmatprep.mubr.f32.mxu1 %v4971_v55 }
 0x14a   :  { %v4482_v43 = vpack.c.bf16 %v2042_v41, %v2035_v42  ;;  %4417 = vmatmul.mubr.f32.vlgmr.msra.gmra.mrb[8].mxu0 %v4931_v16 }
 0x14c   :  { %4350 = vmatmul.mubr.f32.gmra.mrb[6].mxu1 %v4974_v60  ;;  %4483 = vmatprep.subr.bf16.mxu1 %v4482_v43 }
 0x14d   :  { %4485 = vmatpush3.bf16.msra.mxu1 %v4482_v43  ;;  %4360 = vmatprep.mubr.f32.mxu1 %v4899_v1 }
 0x14e   :  { %4487 = vmatprep.subr.bf16.mxu1 %v4486_v21 }
 0x150   :  { %4361 = vmatmul.mubr.f32.vlgmr.msra.gmra.mrb[4].mxu1 %v4931_v16 }
 0x151   :  { %4489 = vmatpush3.bf16.msra.mxu1 %v4486_v21  ;;  %4363 = vmatprep.mubr.f32.mxu1 %v4933_v17 }
 0x152   :  { %4491 = vmatprep.subr.bf16.mxu1 %v4490_v35 }
 0x154   :  { %4364 = vmatmul.mubr.f32.gmra.mrb[6].mxu1 %v4938_v19 }
 0x155   :  { %4493 = vmatpush3.bf16.msra.mxu1 %v4490_v35  ;;  %4374 = vmatprep.mubr.f32.mxu1 %v4902_v3  ;;  %v630_v3 = vpop.permute.xlu0 %629 }
 0x156   :  { %4495 = vmatprep.subr.bf16.mxu1 %v5003_v6 }
 0x158   :  { %4375 = vmatmul.mubr.f32.vlgmr.msra.gmra.mrb[4].mxu1 %v4936_v18 }
 0x159   :  { %4497 = vmatpush3.bf16.msra.mxu1 %v5003_v6  ;;  %4377 = vmatprep.mubr.f32.mxu1 %v4941_v20 }
 0x15a   :  { %4499 = vmatprep.subr.bf16.mxu1 %v4474_v27 }
 0x15c   :  { %4378 = vmatmul.mubr.f32.gmra.mrb[6].mxu1 %v4947_v26 }
 0x15d   :  { %4501 = vmatpush3.bf16.msra.mxu1 %v4474_v27  ;;  %4388 = vmatprep.mubr.f32.mxu1 %v4912_v7  ;;  %v635_v7 = vpop.permute.xlu0 %634 }
 0x15e   :  { %4503 = vmatprep.subr.bf16.mxu1 %v4502_v32 }
 0x160   :  { %4389 = vmatmul.mubr.f32.vlgmr.msra.gmra.mrb[4].mxu1 %v4944_v24 }
 0x161   :  { %4505 = vmatpush3.bf16.msra.mxu1 %v4502_v32  ;;  %4391 = vmatprep.mubr.f32.mxu1 %v4950_v28 }
 0x162   :  { %4507 = vmatprep.subr.bf16.mxu1 %v4506_v40 }
 0x164   :  { %4392 = vmatmul.mubr.f32.gmra.mrb[6].mxu1 %v4958_v38 }
 0x165   :  { %4509 = vmatpush3.bf16.msra.mxu1 %v4506_v40  ;;  %4402 = vmatprep.mubr.f32.mxu1 %v4899_v1 }
 0x166   :  { %4566 = vmatprep.subr.bf16.mxu1 %v5003_v6 }
 0x168   :  { %4403 = vmatmul.mubr.f32.vlgmr.msra.gmra.mrb[4].mxu1 %v4931_v16 }
 0x169   :  { %4568 = vmatpush3.bf16.msra.mxu1 %v5003_v6  ;;  %4405 = vmatprep.mubr.f32.mxu1 %v4933_v17 }
 0x16a   :  { %4567 = vmatprep.subr.bf16.mxu1 %v4474_v27 }
 0x16c   :  { %4406 = vmatmul.mubr.f32.gmra.mrb[6].mxu1 %v4938_v19 }
 0x16d   :  { %4569 = vmatpush3.bf16.msra.mxu1 %v4474_v27  ;;  %4419 = vmatprep.mubr.f32.mxu1 %v4933_v17 }
 0x174   :  { %4420 = vmatmul.mubr.f32.vlgmr.msra.gmra.mrb[6].mxu1 %v4938_v19 }
 0x213   :  { %v4286_v10 = vpop.f32.mrb[0].mxu1 }
 0x214   :  { %v4570_v1 = vadd.f32 %v4286_v10, %v635_v7  ;;  %v1252_v18 = vpop.f32.mrb[1].mxu1 }
 0x215   :  { %v4571_v20 = vadd.f32 %v1252_v18, %v630_v3 }
 0x216   :  { %v5039_v16 = vmax.f32 %v4570_v1, 0.0 }
 0x217   :  { %v5041_v24 = vmax.f32 %v4571_v20, 0.0  ;;  %v4289_v26 = vpop.f32.mrb[2].mxu1 }
 0x218   :  { %v1264_v28 = vpop.f32.mrb[3].mxu1  ;;  %v1282_v38 = vsel %vm1278_vm2, %v5039_v16, 0.0  ;;  %v1296_v17 = vmul.f32 %v5039_v16, %v5039_v16  ;;  %v4572_v4 = vadd.f32 %v4289_v26, %v645_v63 }
 0x219   :  { %1283 = vadd.xlane.f32.xlu1 %v1282_v38  ;;  %v1279_v19 = vsel %vm1278_vm2, %v5041_v24, 0.0  ;;  %v1295_v44 = vmul.f32 %v5041_v24, %v5041_v24  ;;  %v4573_v55 = vadd.f32 %v1264_v28, %v640_v53 }
 0x21a   :  { %1280 = vadd.xlane.f32.xlu0 %v1279_v19  ;;  %v1302_v45 = vsel %vm1278_vm2, %v1296_v17, 0.0  ;;  %v5075_v15 = vmax.f32 %v4572_v4, 0.0 }
 0x21b   :  { %v1299_v46 = vsel %vm1278_vm2, %v1295_v44, 0.0  ;;  %v5061_v61 = vmax.f32 %v4573_v55, 0.0 }
 0x21c   :  { %v1288_v25 = vsel %vm1278_vm2, %v5075_v15, 0.0  ;;  %v1298_v27 = vmul.f32 %v5075_v15, %v5075_v15 }
 0x21d   :  { %1303 = vadd.xlane.f32.xlu1 %v1302_v45  ;;  %v4418_v47 = vpop.f32.mrb[8].mxu0  ;;  %v1285_v6 = vsel %vm1278_vm2, %v5061_v61, 0.0  ;;  %v1297_v8 = vmul.f32 %v5061_v61, %v5061_v61 }
 0x21e   :  { %1300 = vadd.xlane.f32.xlu0 %v1299_v46  ;;  %v2499_v48 = vpop.f32.mrb[9].mxu0  ;;  %v1308_v31 = vsel %vm1278_vm2, %v1298_v27, 0.0 }
 0x21f   :  { %v1305_v21 = vsel %vm1278_vm2, %v1297_v8, 0.0 }
 0x23b   :  { %v4404_v49 = vpop.f32.mrb[4].mxu1 }
 0x23c   :  { %v4574_v50 = vadd.f32 %v4404_v49, %v635_v7  ;;  %v2406_v51 = vpop.f32.mrb[5].mxu1 }
 0x23d   :  { %v4576_v52 = vadd.f32 %v2406_v51, %v630_v3 }
 0x23e   :  { %v4575_v54 = vadd.f32 %v4574_v50, %v4418_v47 }
 0x23f   :  { %v4577_v56 = vadd.f32 %v4576_v52, %v2499_v48 }
 0x240   :  { %v5053_v57 = vmax.f32 %v4575_v54, 0.0 }
 0x241   :  { %v5055_v58 = vmax.f32 %v4577_v56, 0.0 }
 0x242   :  { %v2528_v59 = vsel %vm1278_vm2, %v5053_v57, 0.0  ;;  %v2542_v60 = vmul.f32 %v5053_v57, %v5053_v57 }
 0x243   :  { %2529 = vadd.xlane.f32.xlu0 %v2528_v59  ;;  %v2525_v62 = vsel %vm1278_vm2, %v5055_v58, 0.0  ;;  %v2541_v2 = vmul.f32 %v5055_v58, %v5055_v58 }
 0x244   :  { %2526 = vadd.xlane.f32.xlu1 %v2525_v62  ;;  %v2548_v0 = vsel %vm1278_vm2, %v2542_v60, 0.0 }
 0x245   :  { %v2545_v14 = vsel %vm1278_vm2, %v2541_v2, 0.0 }
 0x247   :  { %v4421_v5 = vpop.f32.mrb[6].mxu1  ;;  %2549 = vadd.xlane.f32.xlu0 %v2548_v0 }
 0x248   :  { %v4578_v9 = vadd.f32 %v4421_v5, %v645_v63  ;;  %v2511_v11 = vpop.f32.mrb[7].mxu1  ;;  %1286 = vadd.xlane.f32.xlu1 %v1285_v6 }
 0x249   :  { %v4579_v13 = vadd.f32 %v2511_v11, %v640_v53 }
 0x24a   :  { %v5072_v12 = vmax.f32 %v4578_v9, 0.0 }
 0x24b   :  { %2546 = vadd.xlane.f32.xlu0 %v2545_v14  ;;  %v5078_v22 = vmax.f32 %v4579_v13, 0.0  ;;  %v2581_v14 = vld [vmem:[%s5395_s4] sm:$0xff] }
 0x24c   :  { %1306 = vadd.xlane.f32.xlu1 %v1305_v21  ;;  %v2534_v23 = vsel %vm1278_vm2, %v5072_v12, 0.0  ;;  %v2544_v33 = vmul.f32 %v5072_v12, %v5072_v12  ;;  %v2582_v21 = vld [vmem:[%s5395_s4 + $0x8] sm:$0xff] }
 0x24d   :  { %v2531_v29 = vsel %vm1278_vm2, %v5078_v22, 0.0  ;;  %v2543_v30 = vmul.f32 %v5078_v22, %v5078_v22 }
 0x24e   :  { %v2554_v34 = vsel %vm1278_vm2, %v2544_v33, 0.0 }
 0x24f   :  { %2535 = vadd.xlane.f32.xlu0 %v2534_v23  ;;  %v2551_v32 = vsel %vm1278_vm2, %v2543_v30, 0.0 }
 0x250   :  { %1289 = vadd.xlane.f32.xlu1 %v1288_v25 }
 0x253   :  { %2532 = vadd.xlane.f32.xlu0 %v2531_v29 }
 0x254   :  { %1309 = vadd.xlane.f32.xlu1 %v1308_v31 }
 0x257   :  { %2552 = vadd.xlane.f32.xlu0 %v2551_v32  ;;  %v2597_v32 = vld [vmem:[%s5396_s5] sm:$0xff] }
 0x25b   :  { %2555 = vadd.xlane.f32.xlu0 %v2554_v34 }
 0x2a6   :  { %v1284_v36 = vpop.xlane.xlu1 %1283 }
 0x2a7   :  { %v1281_v35 = vpop.xlane.xlu0 %1280 }
 0x2aa   :  { %v1304_v39 = vpop.xlane.xlu1 %1303 }
 0x2ab   :  { %v1301_v37 = vpop.xlane.xlu0 %1300 }
 0x2d0   :  { %v2530_v40 = vpop.xlane.xlu0 %2529 }
 0x2d1   :  { %v2538_v41 = vadd.f32 %v2530_v40, %v1284_v36  ;;  %v2527_v42 = vpop.xlane.xlu1 %2526  ;;  %v2583_v40 = vld [vmem:[%s5395_s4 + $0x10] sm:$0xff] }
 0x2d2   :  { %v2537_v3 = vadd.f32 %v2527_v42, %v1281_v35  ;;  %v2610_v42 = vld [vmem:[%s5397_s6 + $0x8] sm:$0xff] }
 0x2d3   :  { %v2562_v43 = vmul.f32 0.03125, %v2538_v41 }
 0x2d4   :  { %v2550_v7 = vpop.xlane.xlu0 %2549  ;;  %v2561_v20 = vmul.f32 0.03125, %v2537_v3 }
 0x2d5   :  { %v2558_v10 = vadd.f32 %v2550_v7, %v1304_v39  ;;  %v1287_v1 = vpop.xlane.xlu1 %1286  ;;  %v2570_v18 = vmul.f32 %v2562_v43, %v2562_v43  ;;  %v2673_v7 = vand.u32 4294901760, %v2610_v42 }
 0x2d6   :  { %v2569_v44 = vmul.f32 %v2561_v20, %v2561_v20 }
 0x2d7   :  { %v2566_v26 = vmul.f32 0.03125, %v2558_v10 }
 0x2d8   :  { %v2547_v28 = vpop.xlane.xlu0 %2546 }
 0x2d9   :  { %v2574_v38 = vsub.f32 %v2566_v26, %v2570_v18  ;;  %v2557_v17 = vadd.f32 %v2547_v28, %v1301_v37  ;;  %v1307_v19 = vpop.xlane.xlu1 %1306  ;;  %v2598_v37 = vld [vmem:[%s5396_s5 + $0x8] sm:$0xff]  ;;  %v2611_v18 = vld [vmem:[%s5397_s6 + $0x10] sm:$0xff]  ;;  %v2584_v26 = vld [vmem:[%s5395_s4 + $0x18] sm:$0xff] }
 0x2db   :  { %v2578_v45 = vmax.f32 %v2574_v38, 0.0  ;;  %v2565_v46 = vmul.f32 0.03125, %v2557_v17  ;;  %v2679_v38 = vand.u32 4294901760, %v2611_v18 }
 0x2dc   :  { %v2536_v47 = vpop.xlane.xlu0 %2535 }
 0x2dd   :  { %v2586_v48 = vadd.f32 1e-05, %v2578_v45  ;;  %v2573_v49 = vsub.f32 %v2565_v46, %v2569_v44  ;;  %v1290_v51 = vpop.xlane.xlu1 %1289 }
 0x2de   :  { %v2540_v55 = vadd.f32 %v2536_v47, %v1290_v51 }
 0x2df   :  { %v2577_v50 = vmax.f32 %v2573_v49, 0.0  ;;  %4742 = vrsqrt.f32 %v2586_v48  ;;  %v2600_v48 = vld [vmem:[%s5396_s5 + $0x18] sm:$0xff] }
 0x2e0   :  { %v2533_v52 = vpop.xlane.xlu0 %2532  ;;  %v2564_v62 = vmul.f32 0.03125, %v2540_v55  ;;  %v2805_v55 = vsub.f32 %v2611_v18, %v2679_v38 }
 0x2e1   :  { %v2585_v53 = vadd.f32 1e-05, %v2577_v50  ;;  %v2539_v54 = vadd.f32 %v2533_v52, %v1287_v1  ;;  %v1310_v2 = vpop.xlane.xlu1 %1309  ;;  %v2609_v1 = vld [vmem:[%s5397_s6] sm:$0xff]  ;;  %v4751_v50 = vmov 0.0   ;;  %v2787_v52 = vsub.f32 %v2610_v42, %v2673_v7 }
 0x2e2   :  { %v2572_v9 = vmul.f32 %v2564_v62, %v2564_v62  ;;  %v2675_v28 = vand.u32 4294901760, %v2609_v1  ;;  %2741 = vmatprep.mubr.f32.mxu0 %v4751_v50  ;;  %3407 = vmatprep.mubr.f32.mxu1 %v4751_v50 }
 0x2e3   :  { %4744 = vrsqrt.f32 %v2585_v53  ;;  %v2563_v56 = vmul.f32 0.03125, %v2539_v54 }
 0x2e4   :  { %v2553_v59 = vpop.xlane.xlu0 %2552  ;;  %v5130_v45 = vpack.c.bf16 %v2679_v38, %v2675_v28  ;;  %v2793_v54 = vsub.f32 %v2609_v1, %v2675_v28 }
 0x2e5   :  { %v2559_v60 = vadd.f32 %v2553_v59, %v1307_v19  ;;  %v2571_v63 = vmul.f32 %v2563_v56, %v2563_v56 }
 0x2e7   :  { %v2567_v0 = vmul.f32 0.03125, %v2559_v60  ;;  %v2794_v60 = vand.u32 4294901760, %v2793_v54 }
 0x2e8   :  { %v2556_v4 = vpop.xlane.xlu0 %2555 }
 0x2e9   :  { %v2575_v5 = vsub.f32 %v2567_v0, %v2571_v63  ;;  %v2560_v6 = vadd.f32 %v2556_v4, %v1310_v2  ;;  %v4743_v8 = vpop.eup %4742  ;;  %v2806_v63 = vand.u32 4294901760, %v2805_v55  ;;  %v2795_v4 = vsub.f32 %v2793_v54, %v2794_v60 }
 0x2ea   :  { %v2594_v30 = vmul.f32 %v4743_v8, %v2582_v21  ;;  %v5141_v21 = vpack.c.bf16 %v2805_v55, %v2793_v54 }
 0x2eb   :  { %v2579_v11 = vmax.f32 %v2575_v5, 0.0  ;;  %v2568_v13 = vmul.f32 0.03125, %v2560_v6  ;;  %v2807_v5 = vsub.f32 %v2805_v55, %v2806_v63  ;;  %v2796_v8 = vand.u32 4294901760, %v2795_v4 }
 0x2ec   :  { %v2602_v36 = vmul.f32 %v2594_v30, %v2562_v43  ;;  %v2612_v43 = vld [vmem:[%s5397_s6 + $0x18] sm:$0xff] }
 0x2ed   :  { %v4745_v23 = vpop.eup %4744  ;;  %v2587_v25 = vadd.f32 1e-05, %v2579_v11  ;;  %v2576_v27 = vsub.f32 %v2568_v13, %v2572_v9  ;;  %v2677_v10 = vand.u32 4294901760, %v2612_v43  ;;  %v2808_v9 = vand.u32 4294901760, %v2807_v5 }
 0x2ee   :  { %v2593_v29 = vmul.f32 %v4745_v23, %v2581_v14  ;;  %v2606_v39 = vsub.f32 %v2598_v37, %v2602_v36 }
 0x2ef   :  { %4746 = vrsqrt.f32 %v2587_v25  ;;  %v2580_v31 = vmax.f32 %v2576_v27, 0.0  ;;  %v5128_v19 = vpack.c.bf16 %v2677_v10, %v2673_v7  ;;  %v2799_v53 = vsub.f32 %v2612_v43, %v2677_v10 }
 0x2f0   :  { %2615 = vperm.xlu1 %4741, %v2593_v29   ;;  %v2601_v33 = vmul.f32 %v2593_v29, %v2561_v20  ;;  %v2599_v20 = vld [vmem:[%s5396_s5 + $0x10] sm:$0xff]  ;;  %v4524_v13 = vpack.c.bf16 %v2808_v9, %v2796_v8  ;;  %v5145_v25 = vpack.c.bf16 %v2806_v63, %v2794_v60 }
 0x2f1   :  { %v2588_v34 = vadd.f32 1e-05, %v2580_v31  ;;  %4519 = vmatprep.subr.bf16.mxu0 %v5128_v19  ;;  %4543 = vmatprep.subr.bf16.mxu1 %v5128_v19  ;;  %v2800_v59 = vand.u32 4294901760, %v2799_v53  ;;  %v4526_v14 = vpack.c.bf16 %v2799_v53, %v2787_v52 }
 0x2f2   :  { %v2605_v35 = vsub.f32 %v2597_v32, %v2601_v33  ;;  %4521 = vmatpush1.bf16.msra.mxu0 %v5130_v45  ;;  %4545 = vmatpush1.bf16.msra.mxu1 %v5130_v45 }
 0x2f3   :  { %4748 = vrsqrt.f32 %v2588_v34  ;;  %v2801_v2 = vsub.f32 %v2799_v53, %v2800_v59 }
 0x2f4   :  { %2620 = vperm.xlu1 %4741, %v2594_v30   ;;  %2639 = vperm.xlu0 %4740, %v2605_v35  }
 0x2f5   :  { %v2802_v6 = vand.u32 4294901760, %v2801_v2 }
 0x2f8   :  { %2644 = vperm.xlu1 %4741, %v2606_v39  }
 0x2f9   :  { %v4747_v41 = vpop.eup %4746 }
 0x2fa   :  { %v2595_v3 = vmul.f32 %v4747_v41, %v2583_v40 }
 0x2fc   :  { %2625 = vperm.xlu0 %4740, %v2595_v3   ;;  %v2603_v17 = vmul.f32 %v2595_v3, %v2563_v56  ;;  %v2788_v56 = vand.u32 4294901760, %v2787_v52 }
 0x2fd   :  { %v4749_v44 = vpop.eup %4748 }
 0x2fe   :  { %v2607_v46 = vsub.f32 %v2599_v20, %v2603_v17  ;;  %v2596_v47 = vmul.f32 %v4749_v44, %v2584_v26  ;;  %v2789_v0 = vsub.f32 %v2787_v52, %v2788_v56  ;;  %v5143_v23 = vpack.c.bf16 %v2800_v59, %v2788_v56 }
 0x300   :  { %2649 = vperm.xlu1 %4741, %v2607_v46   ;;  %2630 = vperm.xlu0 %4740, %v2596_v47   ;;  %v2604_v49 = vmul.f32 %v2596_v47, %v2564_v62  ;;  %v2790_v62 = vand.u32 4294901760, %v2789_v0 }
 0x302   :  { %v2608_v51 = vsub.f32 %v2600_v48, %v2604_v49  ;;  %v4522_v11 = vpack.c.bf16 %v2802_v6, %v2790_v62 }
 0x304   :  { %2654 = vperm.xlu1 %4741, %v2608_v51   ;;  %4523 = vmatprep.subr.bf16.mxu0 %v4522_v11 }
 0x305   :  { %4547 = vmatprep.subr.bf16.mxu1 %v4522_v11 }
 0x36f   :  { %v2616_v27 = vpop.permute.xlu1 %2615 }
 0x370   :  { %v2633_v29 = vmul.f32 %v2616_v27, %v5041_v24  ;;  %v3319_v30 = vmul.f32 %v2616_v27, %v5055_v58 }
 0x373   :  { %v2621_v31 = vpop.permute.xlu1 %2620  ;;  %v2640_v32 = vpop.permute.xlu0 %2639 }
 0x374   :  { %v2657_v33 = vadd.f32 %v2640_v32, %v2633_v29  ;;  %v3323_v34 = vadd.f32 %v3319_v30, %v2640_v32  ;;  %v2634_v35 = vmul.f32 %v2621_v31, %v5039_v16  ;;  %v3320_v36 = vmul.f32 %v2621_v31, %v5053_v57 }
 0x376   :  { %v2662_v37 = vsel %vm1278_vm2, %v2657_v33, 0  ;;  %v3328_v39 = vsel %vm1278_vm2, %v3323_v34, 0 }
 0x377   :  { %v5153_v40 = vand.u32 4294901760, %v2662_v37  ;;  %v5155_v41 = vand.u32 4294901760, %v3328_v39  ;;  %v2645_v42 = vpop.permute.xlu1 %2644 }
 0x378   :  { %v2658_v24 = vadd.f32 %v2645_v42, %v2634_v35  ;;  %v3324_v43 = vadd.f32 %v3320_v36, %v2645_v42 }
 0x379   :  { %v5158_v58 = vsub.f32 %v2662_v37, %v5153_v40  ;;  %v5161_v3 = vsub.f32 %v3328_v39, %v5155_v41 }
 0x37a   :  { %v2665_v16 = vsel %vm1278_vm2, %v2658_v24, 0  ;;  %v3331_v57 = vsel %vm1278_vm2, %v3324_v43, 0 }
 0x37b   :  { %v2744_v7 = vand.u32 4294901760, %v5158_v58  ;;  %v3410_v10 = vand.u32 4294901760, %v5161_v3  ;;  %v5167_v1 = vand.u32 4294901760, %v2665_v16  ;;  %v5169_v18 = vand.u32 4294901760, %v3331_v57  ;;  %v2626_v20 = vpop.permute.xlu0 %2625 }
 0x37c   :  { %v2635_v44 = vmul.f32 %v2626_v20, %v5061_v61  ;;  %v3321_v46 = vmul.f32 %v2626_v20, %v5078_v22 }
 0x37d   :  { %v5172_v26 = vsub.f32 %v2665_v16, %v5167_v1  ;;  %v5175_v28 = vsub.f32 %v3331_v57, %v5169_v18  ;;  %v2745_v38 = vsub.f32 %v5158_v58, %v2744_v7  ;;  %v3411_v17 = vsub.f32 %v5161_v3, %v3410_v10 }
 0x37f   :  { %v2650_v47 = vpop.permute.xlu1 %2649  ;;  %v2631_v48 = vpop.permute.xlu0 %2630  ;;  %v2746_v49 = vand.u32 4294901760, %v2745_v38  ;;  %v3412_v51 = vand.u32 4294901760, %v3411_v17  ;;  %v2755_v52 = vand.u32 4294901760, %v5172_v26  ;;  %v3421_v53 = vand.u32 4294901760, %v5175_v28 }
 0x380   :  { %v2659_v54 = vadd.f32 %v2650_v47, %v2635_v44  ;;  %v3325_v55 = vadd.f32 %v3321_v46, %v2650_v47  ;;  %v2636_v60 = vmul.f32 %v2631_v48, %v5075_v15  ;;  %v3322_v63 = vmul.f32 %v2631_v48, %v5072_v12 }
 0x381   :  { %2747 = vmatmul.mubr.f32.vlgmr.msra.gmra.mrb[10].mxu0 %v2746_v49  ;;  %3413 = vmatmul.mubr.f32.vlgmr.msra.gmra.mrb[8].mxu1 %v3412_v51  ;;  %v2756_v56 = vsub.f32 %v5172_v26, %v2755_v52  ;;  %v3422_v61 = vsub.f32 %v5175_v28, %v3421_v53 }
 0x382   :  { %v2668_v22 = vsel %vm1278_vm2, %v2659_v54, 0  ;;  %v3334_v59 = vsel %vm1278_vm2, %v3325_v55, 0  ;;  %2752 = vmatprep.mubr.f32.mxu0 %v4751_v50  ;;  %3418 = vmatprep.mubr.f32.mxu1 %v4751_v50 }
 0x383   :  { %v5199_v0 = vand.u32 4294901760, %v2668_v22  ;;  %v5201_v2 = vand.u32 4294901760, %v3334_v59  ;;  %v2655_v4 = vpop.permute.xlu1 %2654  ;;  %v2757_v5 = vand.u32 4294901760, %v2756_v56  ;;  %v3423_v62 = vand.u32 4294901760, %v3422_v61  ;;  %4525 = vmatpush1.bf16.msra.mxu0 %v4524_v13  ;;  %4549 = vmatpush1.bf16.msra.mxu1 %v4524_v13 }
 0x384   :  { %v2660_v6 = vadd.f32 %v2655_v4, %v2636_v60  ;;  %v3326_v8 = vadd.f32 %v3322_v63, %v2655_v4  ;;  %4527 = vmatprep.subr.bf16.mxu0 %v4526_v14  ;;  %4551 = vmatprep.subr.bf16.mxu1 %v4526_v14 }
 0x385   :  { %v5204_v15 = vsub.f32 %v2668_v22, %v5199_v0  ;;  %v5207_v12 = vsub.f32 %v3334_v59, %v5201_v2  ;;  %2758 = vmatmul.mubr.f32.gmra.mrb[12].mxu0 %v2757_v5  ;;  %3424 = vmatmul.mubr.f32.gmra.mrb[10].mxu1 %v3423_v62 }
 0x386   :  { %v2671_v9 = vsel %vm1278_vm2, %v2660_v6, 0  ;;  %v3337_v11 = vsel %vm1278_vm2, %v3326_v8, 0  ;;  %2763 = vmatprep.mubr.f32.mxu0 %v4751_v50  ;;  %3429 = vmatprep.mubr.f32.mxu1 %v4751_v50 }
 0x387   :  { %v5213_v13 = vand.u32 4294901760, %v2671_v9  ;;  %v5215_v27 = vand.u32 4294901760, %v3337_v11  ;;  %v2766_v14 = vand.u32 4294901760, %v5204_v15  ;;  %v3432_v29 = vand.u32 4294901760, %v5207_v12 }
 0x389   :  { %v5220_v30 = vsub.f32 %v2671_v9, %v5213_v13  ;;  %v5223_v31 = vsub.f32 %v3337_v11, %v5215_v27  ;;  %v2767_v32 = vsub.f32 %v5204_v15, %v2766_v14  ;;  %v3433_v33 = vsub.f32 %v5207_v12, %v3432_v29 }
 0x38b   :  { %v2768_v34 = vand.u32 4294901760, %v2767_v32  ;;  %v3434_v35 = vand.u32 4294901760, %v3433_v33  ;;  %v2777_v36 = vand.u32 4294901760, %v5220_v30  ;;  %v3443_v37 = vand.u32 4294901760, %v5223_v31 }
 0x38d   :  { %2769 = vmatmul.mubr.f32.gmra.mrb[14].mxu0 %v2768_v34  ;;  %3435 = vmatmul.mubr.f32.gmra.mrb[12].mxu1 %v3434_v35  ;;  %v2778_v39 = vsub.f32 %v5220_v30, %v2777_v36  ;;  %v3444_v42 = vsub.f32 %v5223_v31, %v3443_v37 }
 0x38e   :  { %2774 = vmatprep.mubr.f32.mxu0 %v4751_v50  ;;  %3440 = vmatprep.mubr.f32.mxu1 %v4751_v50 }
 0x38f   :  { %v2779_v24 = vand.u32 4294901760, %v2778_v39  ;;  %v3445_v43 = vand.u32 4294901760, %v3444_v42 }
 0x391   :  { %2780 = vmatmul.mubr.f32.gmra.mrb[16].mxu0 %v2779_v24  ;;  %3446 = vmatmul.mubr.f32.gmra.mrb[14].mxu1 %v3445_v43 }
 0x392   :  { %2870 = vmatprep.mubr.f32.mxu0 %v4751_v50  ;;  %3536 = vmatprep.mubr.f32.mxu1 %v4751_v50 }
 0x395   :  { %2872 = vmatmul.mubr.f32.vlgmr.msra.gmra.mrb[10].mxu0 %v5153_v40  ;;  %3538 = vmatmul.mubr.f32.vlgmr.msra.gmra.mrb[8].mxu1 %v5155_v41 }
 0x396   :  { %4529 = vmatpush1.bf16.msra.mxu0 %v5141_v21  ;;  %4553 = vmatpush1.bf16.msra.mxu1 %v5141_v21 }
 0x397   :  { %2877 = vmatprep.mubr.f32.mxu0 %v4751_v50  ;;  %3543 = vmatprep.mubr.f32.mxu1 %v4751_v50 }
 0x398   :  { %4531 = vmatprep.subr.bf16.mxu0 %v5128_v19  ;;  %4555 = vmatprep.subr.bf16.mxu1 %v5128_v19 }
 0x399   :  { %2879 = vmatmul.mubr.f32.gmra.mrb[12].mxu0 %v5167_v1  ;;  %3545 = vmatmul.mubr.f32.gmra.mrb[10].mxu1 %v5169_v18 }
 0x39a   :  { %2884 = vmatprep.mubr.f32.mxu0 %v4751_v50  ;;  %3550 = vmatprep.mubr.f32.mxu1 %v4751_v50 }
 0x39d   :  { %2886 = vmatmul.mubr.f32.gmra.mrb[14].mxu0 %v5199_v0  ;;  %3552 = vmatmul.mubr.f32.gmra.mrb[12].mxu1 %v5201_v2 }
 0x39e   :  { %2891 = vmatprep.mubr.f32.mxu0 %v4751_v50  ;;  %3557 = vmatprep.mubr.f32.mxu1 %v4751_v50 }
 0x3a1   :  { %2893 = vmatmul.mubr.f32.gmra.mrb[16].mxu0 %v5213_v13  ;;  %3559 = vmatmul.mubr.f32.gmra.mrb[14].mxu1 %v5215_v27 }
 0x3a2   :  { %2971 = vmatprep.mubr.f32.mxu0 %v4751_v50  ;;  %3637 = vmatprep.mubr.f32.mxu1 %v4751_v50 }
 0x3a5   :  { %2974 = vmatmul.mubr.f32.vlgmr.msra.gmra.mrb[10].mxu0 %v5158_v58  ;;  %3640 = vmatmul.mubr.f32.vlgmr.msra.gmra.mrb[8].mxu1 %v5161_v3 }
 0x3a6   :  { %4533 = vmatpush1.bf16.msra.mxu0 %v5130_v45  ;;  %4557 = vmatpush1.bf16.msra.mxu1 %v5130_v45 }
 0x3a7   :  { %2979 = vmatprep.mubr.f32.mxu0 %v4751_v50  ;;  %3645 = vmatprep.mubr.f32.mxu1 %v4751_v50 }
 0x3a8   :  { %4535 = vmatprep.subr.bf16.mxu0 %v5143_v23  ;;  %4559 = vmatprep.subr.bf16.mxu1 %v5143_v23 }
 0x3a9   :  { %2982 = vmatmul.mubr.f32.gmra.mrb[12].mxu0 %v5172_v26  ;;  %3648 = vmatmul.mubr.f32.gmra.mrb[10].mxu1 %v5175_v28 }
 0x3aa   :  { %2987 = vmatprep.mubr.f32.mxu0 %v4751_v50  ;;  %3653 = vmatprep.mubr.f32.mxu1 %v4751_v50 }
 0x3ad   :  { %2990 = vmatmul.mubr.f32.gmra.mrb[14].mxu0 %v5204_v15  ;;  %3656 = vmatmul.mubr.f32.gmra.mrb[12].mxu1 %v5207_v12 }
 0x3ae   :  { %2995 = vmatprep.mubr.f32.mxu0 %v4751_v50  ;;  %3661 = vmatprep.mubr.f32.mxu1 %v4751_v50 }
 0x3b1   :  { %2998 = vmatmul.mubr.f32.gmra.mrb[16].mxu0 %v5220_v30  ;;  %3664 = vmatmul.mubr.f32.gmra.mrb[14].mxu1 %v5223_v31 }
 0x3b2   :  { %3072 = vmatprep.mubr.f32.mxu0 %v4751_v50  ;;  %3738 = vmatprep.mubr.f32.mxu1 %v4751_v50 }
 0x3b5   :  { %3076 = vmatmul.mubr.f32.vlgmr.msra.gmra.mrb[10].mxu0 %v2744_v7  ;;  %3742 = vmatmul.mubr.f32.vlgmr.msra.gmra.mrb[8].mxu1 %v3410_v10 }
 0x3b6   :  { %4537 = vmatpush1.bf16.msra.mxu0 %v5145_v25  ;;  %4561 = vmatpush1.bf16.msra.mxu1 %v5145_v25 }
 0x3b7   :  { %3081 = vmatprep.mubr.f32.mxu0 %v4751_v50  ;;  %3747 = vmatprep.mubr.f32.mxu1 %v4751_v50 }
 0x3b8   :  { %4539 = vmatprep.subr.bf16.mxu0 %v5128_v19  ;;  %4563 = vmatprep.subr.bf16.mxu1 %v5128_v19 }
 0x3b9   :  { %3085 = vmatmul.mubr.f32.gmra.mrb[12].mxu0 %v2755_v52  ;;  %3751 = vmatmul.mubr.f32.gmra.mrb[10].mxu1 %v3421_v53 }
 0x3ba   :  { %3090 = vmatprep.mubr.f32.mxu0 %v4751_v50  ;;  %3756 = vmatprep.mubr.f32.mxu1 %v4751_v50 }
 0x3bd   :  { %3094 = vmatmul.mubr.f32.gmra.mrb[14].mxu0 %v2766_v14  ;;  %3760 = vmatmul.mubr.f32.gmra.mrb[12].mxu1 %v3432_v29 }
 0x3be   :  { %3099 = vmatprep.mubr.f32.mxu0 %v4751_v50  ;;  %3765 = vmatprep.mubr.f32.mxu1 %v4751_v50 }
 0x3c1   :  { %3103 = vmatmul.mubr.f32.gmra.mrb[16].mxu0 %v2777_v36  ;;  %3769 = vmatmul.mubr.f32.gmra.mrb[14].mxu1 %v3443_v37 }
 0x3c2   :  { %3185 = vmatprep.mubr.f32.mxu0 %v4751_v50  ;;  %3851 = vmatprep.mubr.f32.mxu1 %v4751_v50 }
 0x3c5   :  { %3187 = vmatmul.mubr.f32.vlgmr.msra.gmra.mrb[10].mxu0 %v5153_v40  ;;  %3853 = vmatmul.mubr.f32.vlgmr.msra.gmra.mrb[8].mxu1 %v5155_v41 }
 0x3c6   :  { %4541 = vmatpush1.bf16.msra.mxu0 %v5130_v45  ;;  %4565 = vmatpush1.bf16.msra.mxu1 %v5130_v45 }
 0x3c7   :  { %3192 = vmatprep.mubr.f32.mxu0 %v4751_v50  ;;  %3858 = vmatprep.mubr.f32.mxu1 %v4751_v50 }
 0x3c9   :  { %3194 = vmatmul.mubr.f32.gmra.mrb[12].mxu0 %v5167_v1  ;;  %3860 = vmatmul.mubr.f32.gmra.mrb[10].mxu1 %v5169_v18 }
 0x3ca   :  { %3199 = vmatprep.mubr.f32.mxu0 %v4751_v50  ;;  %3865 = vmatprep.mubr.f32.mxu1 %v4751_v50 }
 0x3cd   :  { %3201 = vmatmul.mubr.f32.gmra.mrb[14].mxu0 %v5199_v0  ;;  %3867 = vmatmul.mubr.f32.gmra.mrb[12].mxu1 %v5201_v2 }
 0x3ce   :  { %3206 = vmatprep.mubr.f32.mxu0 %v4751_v50  ;;  %3872 = vmatprep.mubr.f32.mxu1 %v4751_v50 }
 0x3d1   :  { %3208 = vmatmul.mubr.f32.gmra.mrb[16].mxu0 %v5213_v13  ;;  %3874 = vmatmul.mubr.f32.gmra.mrb[14].mxu1 %v5215_v27 }
 0x3d2   :  { %3282 = vmatprep.mubr.f32.mxu0 %v4751_v50  ;;  %3948 = vmatprep.mubr.f32.mxu1 %v4751_v50 }
 0x3d5   :  { %3284 = vmatmul.mubr.f32.vlgmr.msra.gmra.mrb[10].mxu0 %v5153_v40  ;;  %3950 = vmatmul.mubr.f32.vlgmr.msra.gmra.mrb[8].mxu1 %v5155_v41 }
 0x3d6   :  { %3289 = vmatprep.mubr.f32.mxu0 %v4751_v50  ;;  %3955 = vmatprep.mubr.f32.mxu1 %v4751_v50 }
 0x3d9   :  { %3291 = vmatmul.mubr.f32.gmra.mrb[12].mxu0 %v5167_v1  ;;  %3957 = vmatmul.mubr.f32.gmra.mrb[10].mxu1 %v5169_v18 }
 0x3da   :  { %3296 = vmatprep.mubr.f32.mxu0 %v4751_v50  ;;  %3962 = vmatprep.mubr.f32.mxu1 %v4751_v50 }
 0x3dd   :  { %3298 = vmatmul.mubr.f32.gmra.mrb[14].mxu0 %v5199_v0  ;;  %3964 = vmatmul.mubr.f32.gmra.mrb[12].mxu1 %v5201_v2 }
 0x3de   :  { %3303 = vmatprep.mubr.f32.mxu0 %v4751_v50  ;;  %3969 = vmatprep.mubr.f32.mxu1 %v4751_v50 }
 0x3e1   :  { %3305 = vmatmul.mubr.f32.gmra.mrb[16].mxu0 %v5213_v13  ;;  %3971 = vmatmul.mubr.f32.gmra.mrb[14].mxu1 %v5215_v27 }
 0x4a8   :  { %v3285_v19 = vpop.f32.mrb[10].mxu0  ;;  %v3951_v45 = vpop.f32.mrb[8].mxu1 }
 0x4a9   :  { %3311 = vst [vmem:[%s5398_s7] sm:$0xff] %v3285_v19  ;;  %3994 = vst [vmem:[%s5398_s7 + $0x40] sm:$0xff] %v3951_v45  ;;  %v3287_v21 = vpop.f32.mrb[11].mxu0  ;;  %v3953_v23 = vpop.f32.mrb[9].mxu1 }
 0x4aa   :  { %3312 = vst [vmem:[%s5398_s7 + $0x8] sm:$0xff] %v3287_v21  ;;  %3995 = vst [vmem:[%s5398_s7 + $0x48] sm:$0xff] %v3953_v23 }
 0x4ac   :  { %v3292_v50 = vpop.f32.mrb[12].mxu0  ;;  %v3958_v25 = vpop.f32.mrb[10].mxu1 }
 0x4ad   :  { %3313 = vst [vmem:[%s5398_s7 + $0x10] sm:$0xff] %v3292_v50  ;;  %3996 = vst [vmem:[%s5398_s7 + $0x50] sm:$0xff] %v3958_v25  ;;  %v3294_v40 = vpop.f32.mrb[13].mxu0  ;;  %v3960_v41 = vpop.f32.mrb[11].mxu1 }
 0x4ae   :  { %3314 = vst [vmem:[%s5398_s7 + $0x18] sm:$0xff] %v3294_v40  ;;  %3997 = vst [vmem:[%s5398_s7 + $0x58] sm:$0xff] %v3960_v41 }
 0x4b0   :  { %v3299_v58 = vpop.f32.mrb[14].mxu0  ;;  %v3965_v3 = vpop.f32.mrb[12].mxu1 }
 0x4b1   :  { %3315 = vst [vmem:[%s5398_s7 + $0x20] sm:$0xff] %v3299_v58  ;;  %3998 = vst [vmem:[%s5398_s7 + $0x60] sm:$0xff] %v3965_v3  ;;  %v3301_v16 = vpop.f32.mrb[15].mxu0  ;;  %v3967_v57 = vpop.f32.mrb[13].mxu1 }
 0x4b2   :  { %3316 = vst [vmem:[%s5398_s7 + $0x28] sm:$0xff] %v3301_v16  ;;  %3999 = vst [vmem:[%s5398_s7 + $0x68] sm:$0xff] %v3967_v57 }
 0x4b4   :  { %v3306_v7 = vpop.f32.mrb[16].mxu0  ;;  %v3972_v10 = vpop.f32.mrb[14].mxu1 }
 0x4b5   :  { %3317 = vst [vmem:[%s5398_s7 + $0x30] sm:$0xff] %v3306_v7  ;;  %4000 = vst [vmem:[%s5398_s7 + $0x70] sm:$0xff] %v3972_v10  ;;  %v3308_v1 = vpop.f32.mrb[17].mxu0  ;;  %v3974_v18 = vpop.f32.mrb[15].mxu1 }
 0x4b6   :  { %3318 = vst [vmem:[%s5398_s7 + $0x38] sm:$0xff] %v3308_v1  ;;  %4001 = vst [vmem:[%s5398_s7 + $0x78] sm:$0xff] %v3974_v18 }

</bundles_post_ra>
